<compile_context>
chip_gen: v7x
topology: tpu7x:2x2x1
jax: 0.10.0
libtpu: 0.0.40
codegen_flags: <defaults>
</compile_context>

<pallas_src>
import functools

import jax
import jax.numpy as jnp
from jax import lax
from jax.experimental import pallas as pl
from jax.experimental.pallas import tpu as pltpu


def _round_up(x: int, m: int) -> int:
    return (x + m - 1) // m * m


# ---------------------------------------------------------------------------
# Fused kernel: the entire decoder in one launch.
#   refs = (x_ref, w_stack_ref, b_stack_ref, o_ref, h_pad_scratch)
# ---------------------------------------------------------------------------
def _decoder_fused_kernel(x_ref, w_ref, b_ref, o_ref, h_pad,
                          *, num_linear: int, in_dim: int, x_dim: int):
    batch = x_ref.shape[0]

    # Zero-pad the unpadded input into a vreg-aligned activation slab.
    # Padding is exact: padded W rows/cols and bias lanes are 0 and ReLU(0)=0,
    # so padding lanes stay 0 through every layer.
    h_pad[...] = jnp.zeros_like(h_pad)
    h_pad[:batch, :in_dim] = x_ref[...]
    h = h_pad[...]                                   # (B_pad, P) f32, in vregs

    # Hidden layers: Linear + ReLU.  fori_loop (not an unrolled Python loop)
    # bounds the live range of each weight load to one iteration.
    def hidden_layer(l, h):
        w = w_ref[l]                                 # (P, P)   dynamic read
        b = b_ref[l]                                 # (1, P)
        y = jnp.dot(h, w, preferred_element_type=jnp.float32)   # MXU
        return jnp.maximum(y + b, 0.0)               # VPU epilogue

    h = lax.fori_loop(0, num_linear - 1, hidden_layer, h)

    # Output layer (no activation), peeled out of the loop.
    w = w_ref[num_linear - 1]
    b = b_ref[num_linear - 1]
    y = jnp.dot(h, w, preferred_element_type=jnp.float32) + b

    # Single (masked) store of only the valid region — output is unpadded.
    o_ref[...] = y[:batch, :x_dim].astype(o_ref.dtype)


# ---------------------------------------------------------------------------
# Parameter construction / stacking (plain JAX; done once, off the hot path)
# ---------------------------------------------------------------------------
def init_decoder_params(key, X_dim, hidden_dim, latent_dim, num_cond, num_layers):
    """torch.nn.Linear-style U(-1/sqrt(fan_in), 1/sqrt(fan_in)) init.
    Weights stored as (in_features, out_features) so y = x @ W + b."""
    dims = [latent_dim + num_cond] + [hidden_dim] * num_layers + [X_dim]
    params = []
    for fan_in, fan_out in zip(dims[:-1], dims[1:]):
        key, kw, kb = jax.random.split(key, 3)
        bound = float(fan_in) ** -0.5
        w = jax.random.uniform(kw, (fan_in, fan_out), jnp.float32, -bound, bound)
        b = jax.random.uniform(kb, (fan_out,), jnp.float32, -bound, bound)
        params.append((w, b))
    return params, dims


def stack_decoder_params(params):
    """Zero-pad every layer to a common lane-aligned (P, P) tile and stack all
    weights / biases into single slabs -> 2 weight DMAs instead of 2*(L)."""
    feat_dims = [params[0][0].shape[0]] + [w.shape[1] for w, _ in params]
    P = _round_up(max(feat_dims), 128)
    L = len(params)
    w_stack = jnp.zeros((L, P, P), jnp.float32)
    b_stack = jnp.zeros((L, 1, P), jnp.float32)
    for l, (w, b) in enumerate(params):
        fi, fo = w.shape
        w_stack = w_stack.at[l, :fi, :fo].set(w)
        b_stack = b_stack.at[l, 0, :fo].set(b)
    return w_stack, b_stack


# ---------------------------------------------------------------------------
# Forward pass: one pallas_call for the whole decoder
# ---------------------------------------------------------------------------
def decoder_forward(x, w_stack, b_stack, x_dim, logical_dims):
    """Exact forward semantics of the PyTorch Decoder (stacked params)."""
    batch, in_dim = x.shape
    num_linear, P, _ = w_stack.shape
    b_pad = _round_up(batch, 8)

    # Advisory cost from LOGICAL dims (padded slabs would overstate 16-25x).
    flops = sum(2 * batch * fi * fo
                for fi, fo in zip(logical_dims[:-1], logical_dims[1:]))
    bytes_accessed = 4 * (x.size
                          + sum(fi * fo + fo
                                for fi, fo in zip(logical_dims[:-1], logical_dims[1:]))
                          + batch * x_dim)

    kernel = functools.partial(_decoder_fused_kernel,
                               num_linear=num_linear, in_dim=in_dim, x_dim=x_dim)
    return pl.pallas_call(
        kernel,
        out_shape=jax.ShapeDtypeStruct((batch, x_dim), jnp.float32),
        in_specs=[pl.BlockSpec(memory_space=pltpu.VMEM)] * 3,
        out_specs=pl.BlockSpec(memory_space=pltpu.VMEM),
        scratch_shapes=[pltpu.VMEM((b_pad, P), jnp.float32)],
        cost_estimate=pl.CostEstimate(
            flops=flops, transcendentals=0, bytes_accessed=bytes_accessed),
    )(x, w_stack, b_stack)
    # TODO(synk): at deployment scale (batch>=256 / hidden>=1024) add a batch
    # grid with dimension_semantics=("parallel",) (uses both v7x TCs), switch
    # weights to bf16 with f32 accumulation and 256-wide K/N tiles for the
    # v6e/v7x MXU (keep 128-wide tiles + f32 epilogue on v5e), and pipeline
    # K/N via Buffered BlockSpecs so resident weights fit v7x's 64 MiB VMEM.


def decoder_forward_ref(x, params):
    """Pure-JAX reference (unstacked params) for correctness checking."""
    *hidden, (w_out, b_out) = params
    for w, b in hidden:
        x = jnp.maximum(x @ w + b, 0.0)
    return x @ w_out + b_out


if __name__ == "__main__":
    # Small shapes consistent with the module's forward.
    X_dim = 20
    hidden_dim = 32
    latent_dim = 16
    num_cond = 8
    num_layers = 3
    batch = 4

    key = jax.random.PRNGKey(0)
    key, kx = jax.random.split(key)
    # Decoder input: concat of latent sample and condition -> (batch, latent+cond)
    x = jax.random.normal(kx, (batch, latent_dim + num_cond), jnp.float32)

    params, dims = init_decoder_params(
        key, X_dim, hidden_dim, latent_dim, num_cond, num_layers
    )
    w_stack, b_stack = stack_decoder_params(params)

    out = decoder_forward(x, w_stack, b_stack, X_dim, dims)
    out = jax.block_until_ready(out)

    ref = decoder_forward_ref(x, params)
    assert out.shape == (batch, X_dim), out.shape
    assert jnp.allclose(out, ref, atol=1e-4, rtol=1e-4), "mismatch vs JAX reference"

    print("KERNEL_OK")
</pallas_src>

<mosaic_0001>
module attributes {stable_mosaic.version = 11 : i64} {
  func.func @_decoder_fused_kernel(%arg0: memref<4x24xf32, #tpu.memory_space<vmem>>, %arg1: memref<4x128x128xf32, #tpu.memory_space<vmem>>, %arg2: memref<4x1x128xf32, #tpu.memory_space<vmem>>, %arg3: memref<4x20xf32, #tpu.memory_space<vmem>>, %arg4: memref<8x128xf32, #tpu.memory_space<vmem>>) attributes {dimension_semantics = [], scalar_prefetch = 0 : i64, scratch_operands = 1 : i64, tpu.core_type = #tpu.core_type<tc>} {
    %cst = arith.constant 0.000000e+00 : f32
    %0 = vector.broadcast %cst : f32 to vector<8x128xf32>
    %c0 = arith.constant 0 : index
    %c0_0 = arith.constant 0 : index
    %1 = vector.load %arg4[%c0, %c0_0] : memref<8x128xf32, #tpu.memory_space<vmem>>, vector<8x128xf32>
    tpu.vector_store %arg4[%c0, %c0_0], %0 {strides = array<i32>} : memref<8x128xf32, #tpu.memory_space<vmem>>, vector<8x128xf32>,
    %c0_1 = arith.constant 0 : index
    %c0_2 = arith.constant 0 : index
    %2 = vector.load %arg0[%c0_1, %c0_2] : memref<4x24xf32, #tpu.memory_space<vmem>>, vector<4x24xf32>
    %c0_3 = arith.constant 0 : index
    %c0_4 = arith.constant 0 : index
    %3 = vector.load %arg4[%c0_3, %c0_4] : memref<8x128xf32, #tpu.memory_space<vmem>>, vector<4x24xf32>
    tpu.vector_store %arg4[%c0_3, %c0_4], %2 {strides = array<i32>} : memref<8x128xf32, #tpu.memory_space<vmem>>, vector<4x24xf32>,
    %c0_5 = arith.constant 0 : index
    %c0_6 = arith.constant 0 : index
    %4 = vector.load %arg4[%c0_5, %c0_6] : memref<8x128xf32, #tpu.memory_space<vmem>>, vector<8x128xf32>
    %c0_i32 = arith.constant 0 : i32
    %c3_i32 = arith.constant 3 : i32
    %5 = arith.addi %c0_i32, %c3_i32 : i32
    %c1_i32 = arith.constant 1 : i32
    %6 = scf.for %arg5 = %c0_i32 to %5 step %c1_i32 iter_args(%arg6 = %4) -> (vector<8x128xf32>)  : i32 {
      %16 = arith.index_cast %arg5 : i32 to index
      %c0_16 = arith.constant 0 : index
      %c0_17 = arith.constant 0 : index
      %17 = vector.load %arg1[%16, %c0_16, %c0_17] : memref<4x128x128xf32, #tpu.memory_space<vmem>>, vector<1x128x128xf32>
      %18 = vector.shape_cast %17 : vector<1x128x128xf32> to vector<128x128xf32>
      %19 = arith.index_cast %arg5 : i32 to index
      %c0_18 = arith.constant 0 : index
      %c0_19 = arith.constant 0 : index
      %20 = vector.load %arg2[%19, %c0_18, %c0_19] : memref<4x1x128xf32, #tpu.memory_space<vmem>>, vector<1x1x128xf32>
      %21 = vector.shape_cast %20 : vector<1x1x128xf32> to vector<1x128xf32>
      %cst_20 = arith.constant dense<0.000000e+00> : vector<8x128xf32>
      %22 = tpu.matmul %arg6, %18, %cst_20 {dimension_numbers = #tpu.dot_dimension_numbers<[1], [0], [0], [1], [0, 0, 1, 1], [], []>} : vector<8x128xf32>, vector<128x128xf32>, vector<8x128xf32> -> vector<8x128xf32>
      %23 = vector.broadcast %21 : vector<1x128xf32> to vector<8x128xf32>
      %24 = arith.addf %22, %23 : vector<8x128xf32>
      %cst_21 = arith.constant 0.000000e+00 : f32
      %25 = vector.broadcast %cst_21 : f32 to vector<8x128xf32>
      %26 = arith.maximumf %24, %25 : vector<8x128xf32>
      scf.yield %26 : vector<8x128xf32>
    }
    %c3_i32_7 = arith.constant 3 : i32
    %c3 = arith.constant 3 : index
    %c0_8 = arith.constant 0 : index
    %c0_9 = arith.constant 0 : index
    %7 = vector.load %arg1[%c3, %c0_8, %c0_9] : memref<4x128x128xf32, #tpu.memory_space<vmem>>, vector<1x128x128xf32>
    %8 = vector.shape_cast %7 : vector<1x128x128xf32> to vector<128x128xf32>
    %c3_10 = arith.constant 3 : index
    %c0_11 = arith.constant 0 : index
    %c0_12 = arith.constant 0 : index
    %9 = vector.load %arg2[%c3_10, %c0_11, %c0_12] : memref<4x1x128xf32, #tpu.memory_space<vmem>>, vector<1x1x128xf32>
    %10 = vector.shape_cast %9 : vector<1x1x128xf32> to vector<1x128xf32>
    %cst_13 = arith.constant dense<0.000000e+00> : vector<8x128xf32>
    %11 = tpu.matmul %6, %8, %cst_13 {dimension_numbers = #tpu.dot_dimension_numbers<[1], [0], [0], [1], [0, 0, 1, 1], [], []>} : vector<8x128xf32>, vector<128x128xf32>, vector<8x128xf32> -> vector<8x128xf32>
    %12 = vector.broadcast %10 : vector<1x128xf32> to vector<8x128xf32>
    %13 = arith.addf %11, %12 : vector<8x128xf32>
    %14 = vector.extract_strided_slice %13 {offsets = [0, 0], sizes = [4, 20], strides = [1, 1]} : vector<8x128xf32> to vector<4x20xf32>
    %c0_14 = arith.constant 0 : index
    %c0_15 = arith.constant 0 : index
    %15 = vector.load %arg3[%c0_14, %c0_15] : memref<4x20xf32, #tpu.memory_space<vmem>>, vector<4x20xf32>
    tpu.vector_store %arg3[%c0_14, %c0_15], %14 {strides = array<i32>} : memref<4x20xf32, #tpu.memory_space<vmem>>, vector<4x20xf32>,
    return
  }
}

</mosaic_0001>

<bundles_post_ra>
// kernel: tpu_custom_call.1
= control target key start
LH: loop header
LB: loop body
LE: loop exit
PB: predicated region body
PF: predicated region fallthrough
CT: control target
= control target key end

     0   :  { %8 = vsyncpa [#allocation4], 0  ;;  %s660_s0 = inlined_call_operand.hbm [shape: f32[4,24], index: 0, kind: input, shape index: {}]   ;;  %s661_s1 = inlined_call_operand.hbm [shape: f32[4,128,128], index: 1, kind: input, shape index: {}]   ;;  %s662_s2 = inlined_call_operand.vmem [shape: f32[4,1,128], index: 2, kind: input, shape index: {}]   ;;  %s663_s3 = inlined_call_operand.hbm [shape: f32[4,20], index: 3, kind: output, shape index: {}]  }
   0x1   :  { %9 = vsyncpa [#allocation7], 0 }
   0x2   :  { %10 = vsyncpa [#allocation5], 0  ;;  %s545_s12 = smov [#allocation3]   ;;  %s546_s14 = smov [#allocation6]  }
   0x3   :  { %s17_s13 = sshll.u32 %s545_s12, 4  ;;  %s26_s15 = sshll.u32 %s546_s14, 4  ;;  %s18_s13 = int_to_ptr.vmem [resolvable:$true] %s17_s13  ;;  %s576_s15 = int_to_ptr.vmem [resolvable:$true] %s26_s15 }
   0x4   :  { %s457_s18 = scalar_lea.hbm %s660_s0, 64 }
   0x5   :  { %p458_p0 = scmp.ne.s32.totalorder %s660_s0, %s457_s18  ;;  %p461_p1 = scmp.lt.u32.totalorder %s457_s18, %s660_s0 }
   0x7   :  { %p463_p2 = pnand %p461_p1, %p458_p0 }
   0x9   :  { %466 = shalt.err (!%p463_p2)
}
   0xa   :  { %s467_s23 = scalar_lea.vmem %s18_s13, 64  ;;  %p472_p4 = scmp.lt.s32.totalorder %s18_s13, %s18_s13 }
   0xb   :  { %p468_p3 = scmp.ne.s32.totalorder %s18_s13, %s467_s23  ;;  %p473_p5 = scmp.lt.s32.totalorder %s467_s23, %s467_s23 }
   0xd   :  { %p474_p6 = por %p473_p5, %p472_p4 }
   0xf   :  { %p475_p7 = pnand %p474_p6, %p468_p3 }
  0x11   :  { %478 = shalt.err (!%p475_p7)
}
  0x12   :  { %20 = dma.hbm_to_vmem [thread:$0]  %s660_s0, 64, %s18_s13, [#allocation4]  }
  0x13   :  { %s479_s28 = scalar_lea.hbm %s661_s1, 8192 }
  0x14   :  { %p480_p8 = scmp.ne.s32.totalorder %s661_s1, %s479_s28  ;;  %p483_p9 = scmp.lt.u32.totalorder %s479_s28, %s661_s1 }
  0x16   :  { %p485_p10 = pnand %p483_p9, %p480_p8 }
  0x18   :  { %488 = shalt.err (!%p485_p10)
}
  0x19   :  { %s489_s6 = scalar_lea.vmem %s576_s15, 8192  ;;  %p494_p12 = scmp.lt.s32.totalorder %s576_s15, %s576_s15 }
  0x1a   :  { %p490_p11 = scmp.ne.s32.totalorder %s576_s15, %s489_s6  ;;  %p495_p13 = scmp.lt.s32.totalorder %s489_s6, %s489_s6 }
  0x1c   :  { %p496_p0 = por %p495_p13, %p494_p12 }
  0x1e   :  { %p497_p1 = pnand %p496_p0, %p490_p11 }
  0x20   :  { %500 = shalt.err (!%p497_p1)
}
  0x21   :  { %s547_s0 = smov 128   ;;  %s548_s7 = smov 8  }
  0x22   :  { %32 = dma.hbm_to_vmem [thread:$0]  %s661_s1, 8192, %s576_s15, [#allocation7], %s547_s0, %s547_s0, %s548_s7  }
  0x23   :  { %531 = dma.done.wait [#allocation4], 64  }
  0x24   :  { %532 = vsyncadd [#allocation4], 4294967232 }
  0x25   :  { %533 = dma.done.wait [#allocation7], 8192  }
  0x26   :  { %534 = vsyncadd [#allocation7], 4294959104  ;;  %v549_v0 = vmov 0.0   ;;  %vm43_vm0 = vcmask 191488   ;;  %v42_v1 = vld [vmem:[#allocation3] sm:$0xf] }
  0x27   :  { %41 = vst [vmem:[#allocation2] sm:$0xff] %v549_v0  ;;  %s610_s10 = smov 0  }
  0x28   :  { %44 = vst.msk [vmem:[#allocation2] sm:$0xf] %vm43_vm0, %v42_v1 }
  0x2f   :  { %v45_v2 = vld [vmem:[#allocation2] sm:$0xff]  }
  0x30 LB: > { %v550_v3 = vmov 0.0|0.0   ;;  %vm551_vm1 = vmmov 0   ;;  %v552_v4 = vmov 0.0   ;;  %s274_s1 = sshll.u32 %s543_s10, 7  ;;  %s71_s14 = scalar_lea.vmem %s662_s2, %s543_s10  ;;  %s543_s10 = sphi %s610_s10, %s51_s10   ;;  %v539_v2 = vphi %v45_v2, %v664_v2  }
  0x31   : > { %382 = vmatprep.subr.bf16.mxu0 %v550_v3  ;;  %344 = vmatprep.mubr.msk.f32.mxu0 %vm551_vm1, %v552_v4  ;;  %s617_s11 = scalar_lea.vmem [#allocation6], %s274_s1  ;;  %v275_v29 = vld [vmem:[%s71_s14] ss:$0 sm:$0xff]  ;;  %s51_s10 = sadd.s32 1, %s543_s10  }
  0x32   : > { %v55_v5 = vld [vmem:[%s617_s11] sm:$0xff]  ;;  %v56_v6 = vld [vmem:[%s617_s11 + $0x8] sm:$0xff]  ;;  %v57_v7 = vld [vmem:[%s617_s11 + $0x10] sm:$0xff]  ;;  %p48_p2 = scmp.ge.s32.totalorder %s51_s10, 3  }
  0x33   : > { %v383_v8 = vpack.c.bf16 %v56_v6, %v55_v5  ;;  %v58_v9 = vld [vmem:[%s617_s11 + $0x18] sm:$0xff]  ;;  %v59_v11 = vld [vmem:[%s617_s11 + $0x20] sm:$0xff]  ;;  %v60_v12 = vld [vmem:[%s617_s11 + $0x28] sm:$0xff]  ;;  %v553_v37 = vmov (%p48_p2), 0.0|0.0   ;;  %vm554_vm2 = vmmov (%p48_p2), 0   ;;  %s555_s17 = smov (%p48_p2), [#allocation8]  }
  0x34   : > { %v386_v10 = vpack.c.bf16 %v58_v9, %v57_v7  ;;  %v389_v13 = vpack.c.bf16 %v60_v12, %v59_v11  ;;  %v61_v14 = vld [vmem:[%s617_s11 + $0x30] sm:$0xff]  ;;  %v62_v15 = vld [vmem:[%s617_s11 + $0x38] sm:$0xff]  ;;  %v63_v17 = vld [vmem:[%s617_s11 + $0x40] sm:$0xff]  ;;  %s253_s18 = sshll.u32 (%p48_p2), %s555_s17, 4  ;;  %vm245_vm3 = vcmask (%p48_p2), 158720   ;;  %s254_s18 = int_to_ptr.vmem [resolvable:$true] %s253_s18 }
  0x35   : > { %384 = vmatpush3.bf16.msra.mxu0 %v383_v8  ;;  %v392_v16 = vpack.c.bf16 %v62_v15, %v61_v14  ;;  %v64_v18 = vld [vmem:[%s617_s11 + $0x48] sm:$0xff]  ;;  %v65_v20 = vld [vmem:[%s617_s11 + $0x50] sm:$0xff]  ;;  %v66_v21 = vld [vmem:[%s617_s11 + $0x58] sm:$0xff]  ;;  %s501_s19 = scalar_lea.vmem (%p48_p2), %s254_s18, 64  ;;  %p506_p4 = scmp.lt.s32.totalorder (%p48_p2), %s254_s18, %s254_s18 }
  0x36   : > { %385 = vmatprep.subr.bf16.mxu0 %v550_v3  ;;  %v395_v19 = vpack.c.bf16 %v64_v18, %v63_v17  ;;  %v398_v22 = vpack.c.bf16 %v66_v21, %v65_v20  ;;  %v67_v23 = vld [vmem:[%s617_s11 + $0x60] sm:$0xff]  ;;  %v68_v24 = vld [vmem:[%s617_s11 + $0x68] sm:$0xff]  ;;  %v69_v26 = vld [vmem:[%s617_s11 + $0x70] sm:$0xff]  ;;  %p502_p3 = scmp.ne.s32.totalorder (%p48_p2), %s254_s18, %s501_s19  ;;  %p507_p5 = scmp.lt.s32.totalorder (%p48_p2), %s501_s19, %s501_s19 }
  0x37   : > { %v401_v25 = vpack.c.bf16 %v68_v24, %v67_v23  ;;  %v70_v27 = vld [vmem:[%s617_s11 + $0x78] sm:$0xff]  ;;  %v151_v34 = vld [vmem:[#allocation6 + $0x180] sm:$0xff] (%p48_p2)  ;;  %v154_v39 = vld [vmem:[#allocation6 + $0x198] sm:$0xff] (%p48_p2) }
  0x38   : > { %v404_v28 = vpack.c.bf16 %v70_v27, %v69_v26  ;;  %v152_v35 = vld [vmem:[#allocation6 + $0x188] sm:$0xff] (%p48_p2)  ;;  %v153_v36 = vld [vmem:[#allocation6 + $0x190] sm:$0xff] (%p48_p2)  ;;  %v155_v41 = vld [vmem:[#allocation6 + $0x1a0] sm:$0xff] (%p48_p2)  ;;  %p508_p6 = por (%p48_p2), %p507_p5, %p506_p4 }
  0x39   : > { %387 = vmatpush3.bf16.msra.mxu0 %v386_v10  ;;  %v407_v38 = vpack.c.bf16 (%p48_p2), %v152_v35, %v151_v34  ;;  %v410_v40 = vpack.c.bf16 (%p48_p2), %v154_v39, %v153_v36  ;;  %v156_v42 = vld [vmem:[#allocation6 + $0x1a8] sm:$0xff] (%p48_p2)  ;;  %v157_v44 = vld [vmem:[#allocation6 + $0x1b0] sm:$0xff] (%p48_p2)  ;;  %v158_v45 = vld [vmem:[#allocation6 + $0x1b8] sm:$0xff] (%p48_p2) }
  0x3a   : > { %388 = vmatprep.subr.bf16.mxu0 %v550_v3  ;;  %v413_v43 = vpack.c.bf16 (%p48_p2), %v156_v42, %v155_v41  ;;  %v416_v46 = vpack.c.bf16 (%p48_p2), %v158_v45, %v157_v44  ;;  %v159_v47 = vld [vmem:[#allocation6 + $0x1c0] sm:$0xff] (%p48_p2)  ;;  %v160_v48 = vld [vmem:[#allocation6 + $0x1c8] sm:$0xff] (%p48_p2)  ;;  %v161_v50 = vld [vmem:[#allocation6 + $0x1d0] sm:$0xff] (%p48_p2)  ;;  %p509_p7 = pnand (%p48_p2), %p508_p6, %p502_p3 }
  0x3b   :  { %v419_v49 = vpack.c.bf16 (%p48_p2), %v160_v48, %v159_v47  ;;  %v162_v51 = vld [vmem:[#allocation6 + $0x1d8] sm:$0xff] (%p48_p2)  ;;  %v163_v53 = vld [vmem:[#allocation6 + $0x1e0] sm:$0xff] (%p48_p2)  ;;  %v164_v54 = vld [vmem:[#allocation6 + $0x1e8] sm:$0xff] (%p48_p2) }
  0x3c   :  { %v422_v52 = vpack.c.bf16 (%p48_p2), %v162_v51, %v161_v50  ;;  %v425_v55 = vpack.c.bf16 (%p48_p2), %v164_v54, %v163_v53  ;;  %v165_v56 = vld [vmem:[#allocation6 + $0x1f0] sm:$0xff] (%p48_p2)  ;;  %v166_v57 = vld [vmem:[#allocation6 + $0x1f8] sm:$0xff] (%p48_p2) }
  0x3d   : > { %390 = vmatpush3.bf16.msra.mxu0 %v389_v13  ;;  %v428_v58 = vpack.c.bf16 (%p48_p2), %v166_v57, %v165_v56  ;;  %v277_v59 = vld [vmem:[%s662_s2 + $0x3] ss:$0 sm:$0xff] (%p48_p2) }
  0x3e   : > { %391 = vmatprep.subr.bf16.mxu0 %v550_v3 }
  0x41   : > { %393 = vmatpush3.bf16.msra.mxu0 %v392_v16 }
  0x42   : > { %394 = vmatprep.subr.bf16.mxu0 %v550_v3 }
  0x45   : > { %396 = vmatpush3.bf16.msra.mxu0 %v395_v19 }
  0x46   : > { %397 = vmatprep.subr.bf16.mxu0 %v550_v3 }
  0x49   : > { %399 = vmatpush3.bf16.msra.mxu0 %v398_v22 }
  0x4a   : > { %400 = vmatprep.subr.bf16.mxu0 %v550_v3 }
  0x4d   : > { %402 = vmatpush3.bf16.msra.mxu0 %v401_v25 }
  0x4e   : > { %403 = vmatprep.subr.bf16.mxu0 %v550_v3 }
  0x51   : > { %405 = vmatpush3.bf16.msra.mxu0 %v404_v28 }
  0x52   :  { %406 = vmatprep.subr.bf16.mxu0 (%p48_p2), %v553_v37 }
  0x54   : > { %345 = vmatmul.mubr.f32.vlgmr.msra.gmra.mrb[0].mxu0 %v539_v2 }
  0x55   :  { %379 = vmatprep.mubr.msk.f32.mxu0 (%p48_p2), %vm554_vm2, %v549_v0  ;;  %408 = vmatpush3.bf16.msra.mxu0 (%p48_p2), %v407_v38 }
  0x56   :  { %409 = vmatprep.subr.bf16.mxu0 (%p48_p2), %v553_v37 }
  0x59   :  { %411 = vmatpush3.bf16.msra.mxu0 (%p48_p2), %v410_v40 }
  0x5a   :  { %412 = vmatprep.subr.bf16.mxu0 (%p48_p2), %v553_v37 }
  0x5d   :  { %414 = vmatpush3.bf16.msra.mxu0 (%p48_p2), %v413_v43 }
  0x5e   :  { %415 = vmatprep.subr.bf16.mxu0 (%p48_p2), %v553_v37 }
  0x61   :  { %417 = vmatpush3.bf16.msra.mxu0 (%p48_p2), %v416_v46 }
  0x62   :  { %418 = vmatprep.subr.bf16.mxu0 (%p48_p2), %v553_v37 }
  0x65   :  { %420 = vmatpush3.bf16.msra.mxu0 (%p48_p2), %v419_v49 }
  0x66   :  { %421 = vmatprep.subr.bf16.mxu0 (%p48_p2), %v553_v37 }
  0x69   :  { %423 = vmatpush3.bf16.msra.mxu0 (%p48_p2), %v422_v52 }
  0x6a   :  { %424 = vmatprep.subr.bf16.mxu0 (%p48_p2), %v553_v37 }
  0x6d   :  { %426 = vmatpush3.bf16.msra.mxu0 (%p48_p2), %v425_v55 }
  0x6e   :  { %427 = vmatprep.subr.bf16.mxu0 (%p48_p2), %v553_v37 }
  0x71   :  { %429 = vmatpush3.bf16.msra.mxu0 (%p48_p2), %v428_v58 }
 0x126   :  { %50 = sbr.rel (!%p48_p2) target bundleno = 48 (0x30), region = 51 }
 0x127   : > { %v145_v30 = vpop.f32.mrb[0].mxu0 }
 0x128   : > { %v146_v31 = vadd.f32 %v275_v29, %v145_v30  ;;  %v346_v32 = vpop.f32.mrb[1].mxu0 }
 0x12a   : > { %v149_v33 = vmax.f32 %v146_v31, 0.0  }
 0x12c   : > { %v664_v2 = vmov %v149_v33  ;;  %380 = vmatmul.mubr.f32.vlgmr.msra.gmra.mrb[0].mxu0 (%p48_p2), %v149_v33 }
 0x1ff   :  { %v241_v60 = vpop.f32.mrb[0].mxu0 }
 0x200   :  { %v242_v61 = vadd.f32 %v277_v59, %v241_v60  ;;  %v381_v62 = vpop.f32.mrb[1].mxu0 }
 0x202   :  { %246 = vst.msk [vmem:[#allocation8] sm:$0xf] %vm245_vm3, %v242_v61 }
 0x203   :  { %512 = shalt.err (!%p509_p7)
}
 0x204   :  { %s513_s22 = scalar_lea.hbm %s663_s3, 64 }
 0x205   :  { %p514_p8 = scmp.ne.s32.totalorder %s663_s3, %s513_s22  ;;  %p517_p9 = scmp.lt.u32.totalorder %s513_s22, %s663_s3 }
 0x207   :  { %p519_p10 = pnand %p517_p9, %p514_p8 }
 0x209   :  { %522 = shalt.err (!%p519_p10)
}
 0x20a   :  { %256 = dma.vmem_to_hbm [thread:$0]  %s254_s18, 64, %s663_s3, [#allocation5]  }
 0x20b   :  { %535 = dma.done.wait [#allocation5], 64  }
 0x20c   :  { %536 = vsyncadd [#allocation5], 4294967232 }
 0x20d   :  { %260 = vsyncpa [#allocation4], 1 }
 0x20e   :  { %261 = vsyncpa [#allocation7], 1 }
 0x20f   :  { %262 = vsyncpa [#allocation5], 1 }

</bundles_post_ra>
